<compile_context>
chip_gen: v6e
topology: v6e:2x2x1
jax: 0.10.0
libtpu: 0.0.40
codegen_flags: <defaults>
</compile_context>

<pallas_src>
import math
from functools import partial

import jax
import jax.numpy as jnp
import numpy as np
from jax.experimental import pallas as pl
from jax.experimental.pallas import tpu as pltpu


def _cdiv(a, b):
    return -(-a // b)


def _vmem_capacity_bytes():
    """Per-core VMEM capacity; conservative fallback if the query is unavailable."""
    try:
        info = pltpu.get_tpu_info()
        for attr in ("vmem_capacity_bytes", "vmem_size_bytes", "vmem_bytes"):
            cap = getattr(info, attr, None)
            if cap:
                return int(cap)
    except Exception:
        pass
    return 64 * 1024 * 1024  # v7x per-TensorCore size: safe lower bound everywhere


def _per_lane_bytes(C, itemsize):
    """VMEM bytes per spatial lane: 2x in-block + 2x out-block + q + f32 acc + m/l."""
    c_sub = _cdiv(C, 8) * 8
    return c_sub * (5 * itemsize + 4) + 2 * 8 * 4


def _choose_s_tile(S, C, itemsize, batch):
    cap = _vmem_capacity_bytes()
    if S <= 128:
        return S, cap                      # full-dim block (no 128-multiple needed)
    lane_cap = 4096 if cap >= 96 * 1024 * 1024 else 2048   # v5e/v6e vs v7x
    budget = int(cap * 0.35)
    max_lanes = max(128, (budget // _per_lane_bytes(C, itemsize)) // 128 * 128)
    s_full = max(128, (S // 128) * 128)
    s_tile = int(min(max_lanes, lane_cap, s_full))
    # v7x megacore balance: if the (batch x spatial) grid has very few steps,
    # trade a smaller tile for enough steps to feed both TensorCores.
    while batch * _cdiv(S, s_tile) < 4 and s_tile > 128:
        s_tile = max(128, (s_tile // 2) // 128 * 128)
    return s_tile, cap


def _att_fusion_kernel(row_ref, rec_ref, x_ref, o_ref,
                       q_ref, m_ref, l_ref, acc_ref, *, inv_sqrt_dim):
    """row_ref/rec_ref: SMEM scalars; x_ref: (C, s_tile) agent slab; o_ref: (C, s_tile)."""
    b = pl.program_id(0)
    j = pl.program_id(2)            # agent index within the group (innermost axis)
    n = rec_ref[b]                  # valid agents in this group (>= 1)

    @pl.when(j == 0)
    def _init():
        # Agent 0 is both the query and the first key/value: p = exp(0) = 1.
        x0 = x_ref[...]
        q_ref[...] = x0
        m_ref[...] = jnp.sum(x0 * x0, axis=0, keepdims=True,
                             dtype=jnp.float32) * inv_sqrt_dim
        l_ref[...] = jnp.ones_like(l_ref)
        acc_ref[...] = x0.astype(jnp.float32)

    @pl.when((j > 0) & (j < n))
    def _update():
        x_j = x_ref[...]                                   # (C, s_tile), input dtype
        # score_j[s] = sum_c q[c,s] * x_j[c,s] / sqrt(C); product in input dtype,
        # accumulate in f32.
        s_j = jnp.sum(q_ref[...] * x_j, axis=0, keepdims=True,
                      dtype=jnp.float32) * inv_sqrt_dim    # (1, s_tile)
        m_prev = m_ref[...]
        m_new = jnp.maximum(m_prev, s_j)
        alpha = jnp.exp(m_prev - m_new)
        p = jnp.exp(s_j - m_new)
        l_ref[...] = alpha * l_ref[...] + p
        acc_ref[...] = alpha * acc_ref[...] + p * x_j      # f32 accumulator
        m_ref[...] = m_new

    @pl.when(j == pl.num_programs(2) - 1)
    def _finalize():
        l = l_ref[...]
        r = pl.reciprocal(l, approx=True)                  # EUP slot
        r = r * (2.0 - l * r)                              # one Newton step (~1e-7 rel)
        o_ref[...] = (acc_ref[...] * r).astype(o_ref.dtype)


def _att_fusion_call(row_tbl, rec, x3, batch, max_cav, s_tile, vmem_cap):
    """row_tbl: (batch*max_cav,) int32; rec: (batch,) int32; x3: (N, C, S)."""
    N, C, S = x3.shape
    itemsize = jnp.dtype(x3.dtype).itemsize
    grid = (batch, _cdiv(S, s_tile), max_cav)

    kernel = partial(_att_fusion_kernel, inv_sqrt_dim=1.0 / math.sqrt(C))

    needed = _per_lane_bytes(C, itemsize) * s_tile + 2 * 1024 * 1024
    vmem_limit = int(min(max(needed, 16 * 1024 * 1024), vmem_cap * 3 // 4))

    cost = pl.CostEstimate(
        flops=int(S * N * (4 * C + 8)),
        transcendentals=int(S * (2 * N + batch)),
        bytes_accessed=int((N + batch) * C * S * itemsize),
    )

    def x_index_map(b, s, j, row_ref, rec_ref):
        # Clamped row: padded agent steps (j >= rec[b]) map to the same row as the
        # previous step, so the pipeline elides the DMA and pl.when skips compute.
        return (row_ref[b * max_cav + j], 0, s)

    def o_index_map(b, s, j, row_ref, rec_ref):
        return (b, 0, s)

    return pl.pallas_call(
        kernel,
        out_shape=jax.ShapeDtypeStruct((batch, C, S), x3.dtype),
        grid_spec=pltpu.PrefetchScalarGridSpec(
            num_scalar_prefetch=2,
            grid=grid,
            in_specs=[pl.BlockSpec((None, C, s_tile), x_index_map)],
            out_specs=pl.BlockSpec((None, C, s_tile), o_index_map),
            scratch_shapes=[
                pltpu.VMEM((C, s_tile), x3.dtype),      # q: agent-0 slab
                pltpu.VMEM((1, s_tile), jnp.float32),   # running max
                pltpu.VMEM((1, s_tile), jnp.float32),   # running softmax denom
                pltpu.VMEM((C, s_tile), jnp.float32),   # f32 output accumulator
            ],
        ),
        compiler_params=pltpu.CompilerParams(
            dimension_semantics=("parallel", "parallel", "arbitrary"),
            vmem_limit_bytes=vmem_limit,
        ),
        cost_estimate=cost,
    )(row_tbl, rec, x3)


def att_fusion(x, record_len):
    """x: (sum(record_len), C, W, H); record_len: static python sequence of ints (>=1)."""
    record_len = [int(n) for n in record_len]
    assert all(n >= 1 for n in record_len), "record_len entries must be >= 1"
    N, C, W, H = x.shape
    assert N == sum(record_len)
    S = W * H
    batch = len(record_len)
    max_cav = max(record_len)
    itemsize = jnp.dtype(x.dtype).itemsize

    # (group, agent) -> row table, clamped at each group's last valid agent.
    offs = np.zeros(batch, np.int64)
    offs[1:] = np.cumsum(record_len)[:-1]
    row_tbl = np.empty((batch, max_cav), np.int32)
    for b in range(batch):
        for j in range(max_cav):
            row_tbl[b, j] = offs[b] + min(j, record_len[b] - 1)

    s_tile, vmem_cap = _choose_s_tile(S, C, itemsize, batch)

    # NOTE: for very small C (like the C=4 test) sublane utilization is C/8;
    # real v2x-vit feature dims (C >= 64, multiple of 8) fully use the vregs.
    x3 = x.reshape(N, C, S)                       # metadata-only reshape
    out = _att_fusion_call(
        jnp.asarray(row_tbl.reshape(-1)),         # scalar-prefetched row table (SMEM)
        jnp.asarray(record_len, dtype=jnp.int32),  # scalar-prefetched group sizes
        x3, batch, max_cav, s_tile, vmem_cap)
    return out.reshape(batch, C, W, H)            # metadata-only reshape


def _att_fusion_ref(x, record_len):
    """Pure-JAX reference mirroring the PyTorch code."""
    _, C, W, H = x.shape
    outs = []
    off = 0
    for n in record_len:
        xx = x[off:off + n]
        off += n
        xx = xx.reshape(n, C, W * H).transpose(2, 0, 1)            # (S, n, C)
        score = jnp.einsum('snc,smc->snm', xx, xx) / math.sqrt(C)
        attn = jax.nn.softmax(score, axis=-1)
        ctx = jnp.einsum('snm,smc->snc', attn, xx)                 # (S, n, C)
        outs.append(ctx.transpose(1, 2, 0).reshape(n, C, W, H)[0:1])
    return jnp.concatenate(outs, axis=0)


if __name__ == "__main__":
    # Primary check: shapes implied by the module's usage.
    record_len = [2, 3]
    C, W, H = 4, 16, 16
    x = jax.random.normal(jax.random.PRNGKey(0), (sum(record_len), C, W, H),
                          dtype=jnp.float32)
    out = jax.block_until_ready(att_fusion(x, record_len))
    ref = _att_fusion_ref(x, record_len)
    np.testing.assert_allclose(np.asarray(out), np.asarray(ref), rtol=1e-4, atol=1e-4)
    assert out.shape == (len(record_len), C, W, H)

    # Ragged spatial tail (W*H not a multiple of 128) + a singleton group:
    # exercises the no-padding paths end to end.
    record_len2 = [1, 3, 2]
    x2 = jax.random.normal(jax.random.PRNGKey(1), (sum(record_len2), 4, 10, 13),
                           dtype=jnp.float32)
    out2 = jax.block_until_ready(att_fusion(x2, record_len2))
    ref2 = _att_fusion_ref(x2, record_len2)
    np.testing.assert_allclose(np.asarray(out2), np.asarray(ref2), rtol=1e-4, atol=1e-4)

    print("KERNEL_OK")
</pallas_src>

<mosaic_0001>
module attributes {stable_mosaic.version = 11 : i64} {
  func.func @_att_fusion_kernel(%arg0: i32, %arg1: i32, %arg2: i32, %arg3: memref<6xi32, #tpu.memory_space<smem>>, %arg4: memref<2xi32, #tpu.memory_space<smem>>, %arg5: memref<1x4x128xf32, #tpu.memory_space<vmem>>, %arg6: memref<1x4x128xf32, #tpu.memory_space<vmem>>, %arg7: memref<4x128xf32, #tpu.memory_space<vmem>>, %arg8: memref<1x128xf32, #tpu.memory_space<vmem>>, %arg9: memref<1x128xf32, #tpu.memory_space<vmem>>, %arg10: memref<4x128xf32, #tpu.memory_space<vmem>>) attributes {dimension_semantics = [#tpu.dimension_semantics<parallel>, #tpu.dimension_semantics<parallel>, #tpu.dimension_semantics<arbitrary>], iteration_bounds = array<i64: 2, 2, 3>, scalar_prefetch = 2 : i64, scratch_operands = 4 : i64, tpu.core_type = #tpu.core_type<tc>, window_params = [{transform_indices = @transform_0, window_bounds = array<i64: 1, 4, 128>}, {transform_indices = @transform_1, window_bounds = array<i64: 1, 4, 128>}]} {
    %0 = arith.index_cast %arg0 : i32 to index
    %1 = memref.load %arg4[%0] : memref<2xi32, #tpu.memory_space<smem>>
    %c0_i32 = arith.constant 0 : i32
    %2 = arith.cmpi eq, %arg2, %c0_i32 : i32
    %3 = arith.extui %2 : i1 to i32
    %c0_i32_0 = arith.constant 0 : i32
    %4 = arith.cmpi ne, %3, %c0_i32_0 : i32
    scf.if %4 {
      %c0 = arith.constant 0 : index
      %c0_4 = arith.constant 0 : index
      %c0_5 = arith.constant 0 : index
      %13 = vector.load %arg5[%c0, %c0_4, %c0_5] : memref<1x4x128xf32, #tpu.memory_space<vmem>>, vector<1x4x128xf32>
      %14 = vector.shape_cast %13 : vector<1x4x128xf32> to vector<4x128xf32>
      %c0_6 = arith.constant 0 : index
      %c0_7 = arith.constant 0 : index
      %15 = vector.load %arg7[%c0_6, %c0_7] : memref<4x128xf32, #tpu.memory_space<vmem>>, vector<4x128xf32>
      tpu.vector_store %arg7[%c0_6, %c0_7], %14 {strides = array<i32>} : memref<4x128xf32, #tpu.memory_space<vmem>>, vector<4x128xf32>,
      %16 = arith.mulf %14, %14 : vector<4x128xf32>
      %cst = arith.constant dense<0.000000e+00> : vector<128xf32>
      %17 = vector.multi_reduction <add>, %16, %cst [0] : vector<4x128xf32> to vector<128xf32>
      %18 = vector.shape_cast %17 : vector<128xf32> to vector<1x128xf32>
      %cst_8 = arith.constant 5.000000e-01 : f32
      %19 = vector.broadcast %cst_8 : f32 to vector<1x128xf32>
      %20 = arith.mulf %18, %19 : vector<1x128xf32>
      %c0_9 = arith.constant 0 : index
      %c0_10 = arith.constant 0 : index
      %21 = vector.load %arg8[%c0_9, %c0_10] : memref<1x128xf32, #tpu.memory_space<vmem>>, vector<1x128xf32>
      tpu.vector_store %arg8[%c0_9, %c0_10], %20 {strides = array<i32>} : memref<1x128xf32, #tpu.memory_space<vmem>>, vector<1x128xf32>,
      %cst_11 = arith.constant 1.000000e+00 : f32
      %22 = vector.broadcast %cst_11 : f32 to vector<1x128xf32>
      %c0_12 = arith.constant 0 : index
      %c0_13 = arith.constant 0 : index
      %23 = vector.load %arg9[%c0_12, %c0_13] : memref<1x128xf32, #tpu.memory_space<vmem>>, vector<1x128xf32>
      tpu.vector_store %arg9[%c0_12, %c0_13], %22 {strides = array<i32>} : memref<1x128xf32, #tpu.memory_space<vmem>>, vector<1x128xf32>,
      %c0_14 = arith.constant 0 : index
      %c0_15 = arith.constant 0 : index
      %24 = vector.load %arg10[%c0_14, %c0_15] : memref<4x128xf32, #tpu.memory_space<vmem>>, vector<4x128xf32>
      tpu.vector_store %arg10[%c0_14, %c0_15], %14 {strides = array<i32>} : memref<4x128xf32, #tpu.memory_space<vmem>>, vector<4x128xf32>,
    } else {
    }
    %c0_i32_1 = arith.constant 0 : i32
    %5 = arith.cmpi sgt, %arg2, %c0_i32_1 : i32
    %6 = arith.cmpi slt, %arg2, %1 : i32
    %7 = arith.andi %5, %6 : i1
    %8 = arith.extui %7 : i1 to i32
    %c0_i32_2 = arith.constant 0 : i32
    %9 = arith.cmpi ne, %8, %c0_i32_2 : i32
    scf.if %9 {
      %c0 = arith.constant 0 : index
      %c0_4 = arith.constant 0 : index
      %c0_5 = arith.constant 0 : index
      %13 = vector.load %arg5[%c0, %c0_4, %c0_5] : memref<1x4x128xf32, #tpu.memory_space<vmem>>, vector<1x4x128xf32>
      %14 = vector.shape_cast %13 : vector<1x4x128xf32> to vector<4x128xf32>
      %c0_6 = arith.constant 0 : index
      %c0_7 = arith.constant 0 : index
      %15 = vector.load %arg7[%c0_6, %c0_7] : memref<4x128xf32, #tpu.memory_space<vmem>>, vector<4x128xf32>
      %16 = arith.mulf %15, %14 : vector<4x128xf32>
      %cst = arith.constant dense<0.000000e+00> : vector<128xf32>
      %17 = vector.multi_reduction <add>, %16, %cst [0] : vector<4x128xf32> to vector<128xf32>
      %18 = vector.shape_cast %17 : vector<128xf32> to vector<1x128xf32>
      %cst_8 = arith.constant 5.000000e-01 : f32
      %19 = vector.broadcast %cst_8 : f32 to vector<1x128xf32>
      %20 = arith.mulf %18, %19 : vector<1x128xf32>
      %c0_9 = arith.constant 0 : index
      %c0_10 = arith.constant 0 : index
      %21 = vector.load %arg8[%c0_9, %c0_10] : memref<1x128xf32, #tpu.memory_space<vmem>>, vector<1x128xf32>
      %22 = arith.maximumf %21, %20 : vector<1x128xf32>
      %23 = arith.subf %21, %22 : vector<1x128xf32>
      %24 = math.exp %23 : vector<1x128xf32>
      %25 = arith.subf %20, %22 : vector<1x128xf32>
      %26 = math.exp %25 : vector<1x128xf32>
      %c0_11 = arith.constant 0 : index
      %c0_12 = arith.constant 0 : index
      %27 = vector.load %arg9[%c0_11, %c0_12] : memref<1x128xf32, #tpu.memory_space<vmem>>, vector<1x128xf32>
      %28 = arith.mulf %24, %27 : vector<1x128xf32>
      %29 = arith.addf %28, %26 : vector<1x128xf32>
      %c0_13 = arith.constant 0 : index
      %c0_14 = arith.constant 0 : index
      %30 = vector.load %arg9[%c0_13, %c0_14] : memref<1x128xf32, #tpu.memory_space<vmem>>, vector<1x128xf32>
      tpu.vector_store %arg9[%c0_13, %c0_14], %29 {strides = array<i32>} : memref<1x128xf32, #tpu.memory_space<vmem>>, vector<1x128xf32>,
      %c0_15 = arith.constant 0 : index
      %c0_16 = arith.constant 0 : index
      %31 = vector.load %arg10[%c0_15, %c0_16] : memref<4x128xf32, #tpu.memory_space<vmem>>, vector<4x128xf32>
      %32 = vector.broadcast %24 : vector<1x128xf32> to vector<4x128xf32>
      %33 = arith.mulf %32, %31 : vector<4x128xf32>
      %34 = vector.broadcast %26 : vector<1x128xf32> to vector<4x128xf32>
      %35 = arith.mulf %34, %14 : vector<4x128xf32>
      %36 = arith.addf %33, %35 : vector<4x128xf32>
      %c0_17 = arith.constant 0 : index
      %c0_18 = arith.constant 0 : index
      %37 = vector.load %arg10[%c0_17, %c0_18] : memref<4x128xf32, #tpu.memory_space<vmem>>, vector<4x128xf32>
      tpu.vector_store %arg10[%c0_17, %c0_18], %36 {strides = array<i32>} : memref<4x128xf32, #tpu.memory_space<vmem>>, vector<4x128xf32>,
      %c0_19 = arith.constant 0 : index
      %c0_20 = arith.constant 0 : index
      %38 = vector.load %arg8[%c0_19, %c0_20] : memref<1x128xf32, #tpu.memory_space<vmem>>, vector<1x128xf32>
      tpu.vector_store %arg8[%c0_19, %c0_20], %22 {strides = array<i32>} : memref<1x128xf32, #tpu.memory_space<vmem>>, vector<1x128xf32>,
    } else {
    }
    %c2_i32 = arith.constant 2 : i32
    %10 = arith.cmpi eq, %arg2, %c2_i32 : i32
    %11 = arith.extui %10 : i1 to i32
    %c0_i32_3 = arith.constant 0 : i32
    %12 = arith.cmpi ne, %11, %c0_i32_3 : i32
    scf.if %12 {
      %c0 = arith.constant 0 : index
      %c0_4 = arith.constant 0 : index
      %13 = vector.load %arg9[%c0, %c0_4] : memref<1x128xf32, #tpu.memory_space<vmem>>, vector<1x128xf32>
      %14 = tpu.reciprocal %13 {approx = true} : vector<1x128xf32> -> vector<1x128xf32>
      %15 = arith.mulf %13, %14 : vector<1x128xf32>
      %cst = arith.constant 2.000000e+00 : f32
      %16 = vector.broadcast %cst : f32 to vector<1x128xf32>
      %17 = arith.subf %16, %15 : vector<1x128xf32>
      %18 = arith.mulf %14, %17 : vector<1x128xf32>
      %c0_5 = arith.constant 0 : index
      %c0_6 = arith.constant 0 : index
      %19 = vector.load %arg10[%c0_5, %c0_6] : memref<4x128xf32, #tpu.memory_space<vmem>>, vector<4x128xf32>
      %20 = vector.broadcast %18 : vector<1x128xf32> to vector<4x128xf32>
      %21 = arith.mulf %19, %20 : vector<4x128xf32>
      %c0_7 = arith.constant 0 : index
      %c0_8 = arith.constant 0 : index
      %c0_9 = arith.constant 0 : index
      %22 = vector.load %arg6[%c0_7, %c0_8, %c0_9] : memref<1x4x128xf32, #tpu.memory_space<vmem>>, vector<1x4x128xf32>
      %23 = vector.shape_cast %22 : vector<1x4x128xf32> to vector<4x128xf32>
      %24 = vector.shape_cast %21 : vector<4x128xf32> to vector<1x4x128xf32>
      tpu.vector_store %arg6[%c0_7, %c0_8, %c0_9], %24 {strides = array<i32>} : memref<1x4x128xf32, #tpu.memory_space<vmem>>, vector<1x4x128xf32>,
    } else {
    }
    return
  }
  func.func @transform_0(%arg0: i32, %arg1: i32, %arg2: i32, %arg3: memref<6xi32, #tpu.memory_space<smem>>, %arg4: memref<2xi32, #tpu.memory_space<smem>>) -> (i32, i32, i32) {
    %c3_i32 = arith.constant 3 : i32
    %0 = arith.muli %arg0, %c3_i32 : i32
    %1 = arith.addi %0, %arg2 : i32
    %2 = arith.index_cast %1 : i32 to index
    %3 = memref.load %arg3[%2] : memref<6xi32, #tpu.memory_space<smem>>
    %c0_i32 = arith.constant 0 : i32
    %c0_i32_0 = arith.constant 0 : i32
    return %3, %c0_i32, %arg1 : i32, i32, i32
  }
  func.func @transform_1(%arg0: i32, %arg1: i32, %arg2: i32, %arg3: memref<6xi32, #tpu.memory_space<smem>>, %arg4: memref<2xi32, #tpu.memory_space<smem>>) -> (i32, i32, i32) {
    %c0_i32 = arith.constant 0 : i32
    %c0_i32_0 = arith.constant 0 : i32
    return %arg0, %c0_i32, %arg1 : i32, i32, i32
  }
}

</mosaic_0001>

<bundles_post_ra>
// kernel: tpu_custom_call.1
= control target key start
LH: loop header
LB: loop body
LE: loop exit
PB: predicated region body
PF: predicated region fallthrough
CT: control target
= control target key end

     0   :  { %s706_s12 = smov [#allocation7]   ;;  %s991_s0 = inlined_call_operand.hbm [shape: s32[6], index: 0, kind: input, shape index: {}]   ;;  %s992_s2 = inlined_call_operand.hbm [shape: f32[5,4,256], index: 2, kind: input, shape index: {}]   ;;  %s993_s3 = inlined_call_operand.hbm [shape: f32[2,4,256], index: 3, kind: output, shape index: {}]   ;;  %s994_s1 = inlined_call_operand.vmem [shape: s32[2], index: 1, kind: input, shape index: {}]  }
   0x1   :  { %9 = dma.hbm_to_smem %s991_s0, 16, %s706_s12, [#allocation6] }
   0x2   :  { %s10_s17 = sshll.u32 %s994_s1, 4  ;;  %s11_s17 = int_to_ptr.vmem [resolvable:$true] %s10_s17 }
   0x3   :  { %s526_s18 = scalar_lea.vmem %s11_s17, 16  ;;  %p531_p1 = scmp.lt.s32.totalorder %s11_s17, %s11_s17 }
   0x4   :  { %p527_p0 = scmp.ne.s32.totalorder %s11_s17, %s526_s18  ;;  %p532_p2 = scmp.lt.s32.totalorder %s526_s18, %s526_s18 }
   0x6   :  { %p533_p3 = por %p532_p2, %p531_p1 }
   0x8   :  { %p534_p4 = pnand %p533_p3, %p527_p0 }
   0xa   :  { %537 = shalt.err (!%p534_p4)  }
   0xb   :  { %s707_s19 = smov [#allocation8]  }
   0xc   :  { %13 = dma.vmem_to_smem %s11_s17, 16, %s707_s19, [#allocation6] }
   0xd   :  { %644 = dma.done.wait [#allocation6], 32 }
   0xe   :  { %645 = vsyncadd [#allocation6], 4294967264 }
   0xf   :  { %15 = sfence }
  0x10   :  { %16 = vsyncpa [#allocation10], 0 }
  0x11   :  { %18 = vsyncpa [#allocation10 + $0x1], 0 }
  0x12   :  { %19 = vsyncpa [#allocation11], 0 }
  0x13   :  { %21 = vsyncpa [#allocation11 + $0x1], 0  ;;  %s737_s0 = smov 0   ;;  %s739_s1 = smov 0  }
  0x14   :  { %s741_s20 = smov 0   ;;  %s743_s21 = smov 0  }
  0x15   :  { %s745_s22 = smov 0   ;;  %s747_s23 = smov 0  }
  0x16   :  { %s749_s24 = smov 0   ;;  %s751_s25 = smov 0  }
  0x17   :  { %s753_s26 = smov 0   ;;  %s755_s27 = smov 0  }
  0x18   :  { %s757_s28 = smov 0   ;;  %s759_s29 = smov 0  }
  0x19   :  { %s761_s30 = smov 0  }
  0x1a LB: > { %1003 = sst [smem:[#allocation18_spill]] %s676_s23  ;;  %s370_s4 = sadd.s32 4294967295, %s704_s30   ;;  %s704_s30 = sphi %s761_s30, %s27_s30   ;;  %s700_s29 = sphi %s759_s29, %s1028_s29   ;;  %s696_s28 = sphi %s757_s28, %s1036_s28   ;;  %s692_s27 = sphi %s755_s27, %s1026_s27   ;;  %s688_s26 = sphi %s753_s26, %s1025_s26   ;;  %s684_s25 = sphi %s751_s25, %s1035_s25   ;;  %s680_s24 = sphi %s749_s24, %s1034_s24   ;;  %s676_s23 = sphi %s747_s23, %s1023_s23   ;;  %s672_s22 = sphi %s745_s22, %s1033_s22   ;;  %s668_s21 = sphi %s743_s21, %s1032_s21   ;;  %s664_s20 = sphi %s741_s20, %s1031_s20   ;;  %s660_s1 = sphi %s739_s1, %s1030_s1   ;;  %s656_s0 = sphi %s737_s0, %s1029_s0  }
  0x1b   : > { %1004 = sst [smem:[#allocation19_spill]] %s692_s27  ;;  %s39_s5 = sadd.s32 1, %s692_s27 }
  0x1c   : > { %1005 = sst [smem:[#allocation20_spill]] %s700_s29  ;;  %p40_p5 = scmp.ge.s32.totalorder %s39_s5, 3 }
  0x1d   : > { %s42_s6 = sadd.s32 1, %s696_s28  ;;  %s371_s7 = sadd.s32 4294967294, %s704_s30  }
  0x1e   : > { %s50_s8 = smul.u32 3, %s700_s29  ;;  %s1038_s5 = smov (%p40_p5, %s39_s5), 0 }
  0x1f   : > { %1006 = sst [smem:[#allocation21_spill]] %s1038_s5  ;;  %s1040_s6 = smov (!%p40_p5, %s42_s6), %s696_s28 }
  0x20   : > { %s46_s9 = sadd.s32 1, %s700_s29  ;;  %s812_s10 = sadd.s32 %s692_s27, %s50_s8 }
  0x21   : > { %p44_p6 = scmp.ge.s32.totalorder %s1040_s6, 2  ;;  %p68_p7 = scmp.ne.s32.totalorder %s676_s23, %s672_s22 }
  0x22   : > { %s817_s11 = sld [smem:[#allocation7 + %s812_s10]]  ;;  %p69_p8 = scmp.eq.s32.totalorder %s704_s30, 0 }
  0x23   : > { %s1042_s6 = smov (%p44_p6, %s1040_s6), 0  ;;  %s1044_s9 = smov (!%p44_p6, %s46_s9), %s700_s29 }
  0x24   : > { %1007 = sst [smem:[#allocation22_spill]] %s1042_s6  ;;  %s57_s12 = ssub.s32 %s696_s28, %s1042_s6 }
  0x25   : > { %p74_p9 = scmp.ne.s32.totalorder %s672_s22, %s668_s21  ;;  %p48_p10 = scmp.ge.s32.totalorder %s1044_s9, 2 }
  0x26   : > { %p75_p11 = scmp.eq.s32.totalorder %s370_s4, 0  ;;  %s89_s13 = sadd.s32 1, %s664_s20 }
  0x27   : > { %p99_p12 = scmp.ne.s32.totalorder %s664_s20, %s660_s1  ;;  %s1046_s9 = smov (%p48_p10, %s1044_s9), 0 }
  0x28   : > { %1008 = sst [smem:[#allocation23_spill]] %s1046_s9  ;;  %p832_p13 = por %p75_p11, %p74_p9 }
  0x29   : > { %p100_p0 = scmp.eq.s32.totalorder %s370_s4, 11  ;;  %s53_s15 = smul.u32 3, %s1046_s9 }
  0x2a   : > { %s1009_s14 = scalar_select %p832_p13, 1, 0 }
  0x2b   : > { %s84_s16 = ssub.s32 %s700_s29, %s1046_s9  ;;  %p839_p1 = por %p100_p0, %p99_p12 }
  0x2c   : > { %s86_s17 = sor.u32 %s84_s16, %s57_s12  ;;  %s54_s19 = sadd.s32 %s53_s15, %s1038_s5 }
  0x2d   : > { %s1010_s18 = scalar_select %p839_p1, 1, 0 }
  0x2e   : > { %p87_p2 = scmp.eq.s32.totalorder %s86_s17, 0  ;;  %s55_s21 = sld [smem:[#allocation7 + %s54_s19]] }
  0x2f   : > { %p105_p3 = scmp.ne.s32.totalorder %s660_s1, %s656_s0  ;;  %p106_p4 = scmp.eq.s32.totalorder %s371_s7, 11 }
  0x30   : > { %s847_s8 = scalar_select %p87_p2, %s664_s20, %s89_s13  }
  0x31   : > { %p851_p5 = por %p106_p4, %p105_p3  ;;  %s126_s16 = sand.u32 1, %s676_s23  }
  0x32   : > { %1011 = sst [smem:[#allocation24_spill]] %s847_s8  ;;  %s61_s9 = sadd.s32 1, %s676_s23 }
  0x33   : > { %s1012_s4 = scalar_select %p851_p5, 1, 0 }
  0x34   : > { %p70_p6 = por %p69_p8, %p68_p7  ;;  %s56_s15 = ssub.s32 %s817_s11, %s55_s21 }
  0x35   : > { %p403_p9 = scmp.lt.s32.totalorder %s704_s30, 12  ;;  %s58_s17 = sor.u32 %s57_s12, %s56_s15 }
  0x36   : > { %s374_s19 = sshll.u32 %s126_s16, 2  ;;  %p59_p10 = scmp.eq.s32.totalorder %s58_s17, 0 }
  0x37   : > { %p864_p11 = pnand %p403_p9, %p70_p6  ;;  %s1048_s10 = smov (!%p70_p6, %s812_s10), 0 }
  0x38   : > { %s387_s7 = scalar_select %p70_p6, [#allocation7], [#allocation13] }
  0x39   : > { %s869_s6 = scalar_select %p59_p10, %s676_s23, %s61_s9  }
  0x3a   : > { %s1050_s7 = smov (!%p403_p9, %s387_s7), [#allocation14]  ;;  %s1052_s10 = smov (!%p403_p9, %s1048_s10), 0 }
  0x3b   : > { %1014 = sst [smem:[#allocation25_spill]] %s869_s6  ;;  %p377_p12 = scmp.ge.s32.totalorder %s704_s30, 1 }
  0x3c   : > { %s133_s5 = sld [smem:[%s1050_s7 + %s1052_s10]]  ;;  %p147_p7 = scmp.lt.s32.totalorder %s704_s30, 13 }
  0x3d   : > { %s130_s12 = scalar_lea.vmem [#allocation9], %s374_s19  ;;  %s127_s23 = scalar_lea.sflag [#allocation10], %s126_s16 }
  0x3e   : > { %p874_p8 = pnand %p377_p12, %p147_p7  ;;  %s142_s21 = sshll.u32 %s130_s12, 4  ;;  %s879_s21 = int_to_ptr.vmem [resolvable:$true] %s142_s21 }
  0x3f   : > { %p540_p2 = pneg %p864_p11  ;;  %s543_s19 = scalar_lea.hbm %s992_s2, 640 }
  0x40   : > { %s1015_s11 = scalar_select %p874_p8, 1, 0 }
  0x42   : > { %s375_s15 = sshll.u32 %s133_s5, 1 }
  0x43   : > { %s138_s17 = sadd.s32 %s696_s28, %s375_s15 }
  0x44   : > { %s376_s29 = sshll.u32 %s138_s17, 6 }
  0x45   : > { %s140_s6 = scalar_lea.hbm %s992_s2, %s376_s29 }
  0x46   : > { %s538_s8 = scalar_lea.hbm %s140_s6, 64  ;;  %p544_p6 = scmp.lt.s32.totalorder %s140_s6, %s992_s2 }
  0x47   : > { %p539_p0 = scmp.ne.s32.totalorder %s140_s6, %s538_s8  ;;  %p545_p9 = scmp.lt.s32.totalorder %s543_s19, %s538_s8 }
  0x49   : > { %p541_p3 = pnand %p540_p2, %p539_p0  ;;  %p546_p10 = por %p545_p9, %p544_p6 }
  0x4b   : > { %p542_p4 = pneg %p541_p3 }
  0x4d   : > { %p547_p12 = pnand %p546_p10, %p542_p4 }
  0x4f   : > { %550 = shalt.err (!%p547_p12)
}
  0x50   : > { %s551_s27 = scalar_lea.vmem %s879_s21, 64  ;;  %s708_s29 = smov [#allocation9]  }
  0x51   : > { %p552_p7 = scmp.ne.s32.totalorder %s879_s21, %s551_s27  ;;  %s556_s16 = sshll.u32 %s708_s29, 4  ;;  %s557_s16 = int_to_ptr.vmem [resolvable:$false] %s556_s16 }
  0x52   : > { %s558_s15 = scalar_lea.vmem %s557_s16, 128  ;;  %p559_p3 = scmp.lt.s32.totalorder %s879_s21, %s557_s16 }
  0x53   : > { %p554_p5 = pnand %p552_p7, %p540_p2  ;;  %p560_p1 = scmp.lt.s32.totalorder %s558_s15, %s551_s27 }
  0x55   : > { %p555_p0 = pneg %p554_p5  ;;  %p561_p13 = por %p560_p1, %p559_p3 }
  0x57   : > { %p562_p8 = pnand %p561_p13, %p555_p0 }
  0x59   : > { %565 = shalt.err (!%p562_p8)
}
  0x5a   : > { %398 = dma.hbm_to_vmem [thread:$0]  (!%p864_p11), %s140_s6, 64, %s879_s21, %s127_s23  }
  0x5b   : > { %p1016_p4 = scmp.ne.s32.totalorder %s1015_s11, 0 }
  0x5c   : > { %s153_s8 = sand.u32 (!%p1016_p4), 1, %s672_s22   ;;  %p1017_p5 = scmp.ne.s32.totalorder (!%p1016_p4), %s1009_s14, 0 }
  0x5d   : > { %151 = sbr.rel (%p1016_p4) target bundleno = 239 (0xef), region = 24  ;;  %s901_s17 = sshll.u32 (!%p1016_p4), %s153_s8, 2 }
  0x5e   : > { %s154_s9 = scalar_lea.sflag (!%p1016_p4), [#allocation10], %s153_s8  ;;  %s157_s10 = scalar_lea.vmem (!%p1016_p4), [#allocation9], %s901_s17 }
  0x62   : > { %647 = dma.done.wait (%p1017_p5), %s154_s9, 64  }
  0x63   : > { %649 = vsyncadd (%p1017_p5), %s154_s9, 4294967232  ;;  %s173_s23 = sand.u32 1, %s660_s1   ;;  %s179_s6 = sld [smem:[#allocation8 + %s688_s26]] }
  0x64   : > { %s912_s13 = sshll.u32 %s173_s23, 2  ;;  %p380_p13 = scmp.ne.s32.totalorder %s680_s24, 0 }
  0x65   : > { %s175_s11 = scalar_lea.vmem [#allocation12], %s912_s13 }
  0x66   : > { %183 = sbr.rel (%p380_p13) target bundleno = 126 (0x7e), region = 32 }
  0x6b   : > { %v184_v0 = vld [vmem:[%s157_s10] sm:$0xf]  ;;  %vm187_vm0 = vcmask 1043456   ;;  %v709_v2 = vmov 1.0  }
  0x6c   : > { %185 = vst [vmem:[#allocation2] sm:$0xf] %v184_v0  ;;  %v186_v1 = vmul.f32 %v184_v0, %v184_v0  ;;  %198 = vst [vmem:[#allocation5] sm:$0xf] %v184_v0 }
  0x6d   : > { %197 = vst [vmem:[#allocation4] sm:$0x1] %v709_v2 }
  0x6e   : > { %v188_v3 = vsel %vm187_vm0, %v186_v1, 0.0 }
  0x6f   : > { %v189_v4 = vrot.slane %v188_v3, 4 }
  0x71   : > { %v190_v5 = vadd.f32 %v189_v4, %v188_v3 }
  0x73   : > { %v191_v6 = vrot.slane %v190_v5, 2 }
  0x75   : > { %v192_v7 = vadd.f32 %v191_v6, %v190_v5 }
  0x77   : > { %v193_v8 = vrot.slane %v192_v7, 1 }
  0x79   : > { %v194_v9 = vadd.f32 %v193_v8, %v192_v7 }
  0x7b   : > { %v195_v10 = vmul.f32 0.5, %v194_v9 }
  0x7d   : > { %196 = vst [vmem:[#allocation3] sm:$0x1] %v195_v10 }
  0x7e PF: > { %p199_p1 = scmp.gt.s32.totalorder %s680_s24, 0  ;;  %p200_p11 = scmp.lt.s32.totalorder %s680_s24, %s179_s6 }
  0x80   : > { %p201_p8 = pnand %p200_p11, %p199_p1 }
  0x82   : > { %204 = sbr.rel (%p201_p8) target bundleno = 181 (0xb5), region = 36 }
  0x87   : > { %v205_v11 = vld [vmem:[%s157_s10] sm:$0xf]  ;;  %v206_v12 = vld [vmem:[#allocation2] sm:$0xf]  ;;  %vm208_vm1 = vcmask 1043456   ;;  %v231_v28 = vlaneseq }
  0x88   : > { %v207_v13 = vmul.f32 %v206_v12, %v205_v11  ;;  %v217_v21 = vld [vmem:[#allocation3] sm:$0x1]  ;;  %v225_v31 = vld [vmem:[#allocation4] sm:$0x1]  ;;  %v229_v33 = vld [vmem:[#allocation5] sm:$0xf] }
  0x89   : > { %v232_v29 = vshrl.u32 %v231_v28, 7 }
  0x8a   : > { %v209_v14 = vsel %vm208_vm1, %v207_v13, 0.0 }
  0x8b   : > { %v210_v15 = vrot.slane %v209_v14, 4  ;;  %v233_v30 = vsub.s32 0, %v232_v29 }
  0x8d   : > { %v211_v16 = vadd.f32 %v210_v15, %v209_v14 }
  0x8f   : > { %v212_v17 = vrot.slane %v211_v16, 2 }
  0x91   : > { %v213_v18 = vadd.f32 %v212_v17, %v211_v16 }
  0x93   : > { %v214_v19 = vrot.slane %v213_v18, 1 }
  0x95   : > { %v215_v20 = vadd.f32 %v214_v19, %v213_v18 }
  0x97   : > { %v216_v22 = vmul.f32 0.5, %v215_v20 }
  0x99   : > { %v218_v23 = vmax.f32 %v217_v21, %v216_v22 }
  0x9b   : > { %v219_v24 = vsub.f32 %v217_v21, %v218_v23  ;;  %v222_v25 = vsub.f32 %v216_v22, %v218_v23  ;;  %244 = vst [vmem:[#allocation3] sm:$0x1] %v218_v23 }
  0x9d   : > { %v220_v26 = vmul.f32 1.442695, %v219_v24  ;;  %v223_v27 = vmul.f32 1.442695, %v222_v25 }
  0x9f   : > { %512 = vpow2.f32 %v220_v26 }
  0xa0   : > { %514 = vpow2.f32 %v223_v27 }
  0xac   : > { %v513_v32 = vpop.eup %512 }
  0xad   : > { %v515_v34 = vpop.eup %514  ;;  %v226_v35 = vmul.f32 %v513_v32, %v225_v31  ;;  %v234_v36 = vrot.slane %v513_v32, %v233_v30 }
  0xae   : > { %v240_v37 = vrot.slane %v515_v34, %v233_v30 }
  0xaf   : > { %v227_v38 = vadd.f32 %v515_v34, %v226_v35  ;;  %v236_v39 = vmul.f32 %v234_v36, %v229_v33 }
  0xb0   : > { %v241_v40 = vmul.f32 %v240_v37, %v205_v11 }
  0xb1   : > { %228 = vst [vmem:[#allocation4] sm:$0x1] %v227_v38 }
  0xb2   : > { %v242_v41 = vadd.f32 %v241_v40, %v236_v39 }
  0xb4   : > { %243 = vst [vmem:[#allocation5] sm:$0xf] %v242_v41 }
  0xb5 PF: > { %p381_p2 = scmp.ne.s32.totalorder %s680_s24, 2 }
  0xb7   : > { %248 = sbr.rel (%p381_p2) target bundleno = 214 (0xd6), region = 40 }
  0xbc   : > { %v249_v42 = vld [vmem:[#allocation4] sm:$0x1]  ;;  %v256_v43 = vlaneseq  ;;  %v254_v50 = vld [vmem:[#allocation5] sm:$0xf] }
  0xbd   : > { %516 = vrcp.f32 %v249_v42 }
  0xbe   : > { %v257_v44 = vshrl.u32 %v256_v43, 7 }
  0xc0   : > { %v258_v48 = vsub.s32 0, %v257_v44 }
  0xca   : > { %v517_v45 = vpop.eup %516 }
  0xcb   : > { %v251_v46 = vmul.f32 %v517_v45, %v249_v42 }
  0xcd   : > { %v252_v47 = vsub.f32 2.0, %v251_v46 }
  0xcf   : > { %v253_v49 = vmul.f32 %v517_v45, %v252_v47 }
  0xd1   : > { %v259_v51 = vrot.slane %v253_v49, %v258_v48 }
  0xd3   : > { %v261_v52 = vmul.f32 %v259_v51, %v254_v50 }
  0xd5   : > { %262 = vst [vmem:[%s175_s11] sm:$0xf] %v261_v52 }
  0xd6 PF: > { %s383_s24 = sshll.u32 %s688_s26, 1  ;;  %s279_s21 = sshll.u32 %s175_s11, 4  ;;  %s280_s21 = int_to_ptr.vmem [resolvable:$true] %s279_s21 }
  0xd7   : > { %s275_s14 = sadd.s32 %s684_s25, %s383_s24  ;;  %s264_s27 = scalar_lea.sflag [#allocation11], %s173_s23 }
  0xd8   : > { %s384_s7 = sshll.u32 %s275_s14, 6  ;;  %s566_s29 = scalar_lea.vmem %s280_s21, 64 }
  0xd9   : > { %s277_s12 = scalar_lea.hbm %s993_s3, %s384_s7  ;;  %p567_p6 = scmp.ne.s32.totalorder %s280_s21, %s566_s29 }
  0xda   : > { %p1018_p9 = scmp.ne.s32.totalorder %s1010_s18, 0  ;;  %s710_s16 = smov [#allocation12]  }
  0xdb   : > { %s570_s15 = sshll.u32 %s710_s16, 4  ;;  %s571_s15 = int_to_ptr.vmem [resolvable:$false] %s570_s15 }
  0xdc   : > { %p568_p10 = pnand %p567_p6, %p1018_p9  ;;  %s572_s26 = scalar_lea.vmem %s571_s15, 128 }
  0xdd   : > { %p573_p7 = scmp.lt.s32.totalorder %s280_s21, %s571_s15  ;;  %p574_p0 = scmp.lt.s32.totalorder %s572_s26, %s566_s29 }
  0xde   : > { %p569_p12 = pneg %p568_p10 }
  0xdf   : > { %p575_p3 = por %p574_p0, %p573_p7 }
  0xe1   : > { %p576_p4 = pnand %p575_p3, %p569_p12 }
  0xe3   : > { %579 = shalt.err (!%p576_p4)
}
  0xe4   : > { %s580_s25 = scalar_lea.hbm %s277_s12, 64  ;;  %s584_s9 = scalar_lea.hbm %s993_s3, 256 }
  0xe5   : > { %p581_p5 = scmp.ne.s32.totalorder %s277_s12, %s580_s25  ;;  %p585_p11 = scmp.lt.s32.totalorder %s277_s12, %s993_s3 }
  0xe6   : > { %p586_p8 = scmp.lt.s32.totalorder %s584_s9, %s580_s25 }
  0xe7   : > { %p582_p13 = pnand %p581_p5, %p1018_p9 }
  0xe8   : > { %p587_p2 = por %p586_p8, %p585_p11 }
  0xe9   : > { %p583_p1 = pneg %p582_p13 }
  0xeb   : > { %p588_p6 = pnand %p587_p2, %p583_p1 }
  0xed   : > { %591 = shalt.err (!%p588_p6)
}
  0xee   : > { %391 = dma.vmem_to_hbm [thread:$0]  (%p1018_p9), %s280_s21, 64, %s277_s12, %s264_s27  }
  0xef PF: > { %p404_p10 = scmp.ge.s32.totalorder %s704_s30, 2  ;;  %s291_s6 = sand.u32 1, %s656_s0  }
  0xf0   : > { %p1019_p12 = scmp.ne.s32.totalorder %s1012_s4, 0  ;;  %s292_s13 = scalar_lea.sflag [#allocation11], %s291_s6 }
  0xf2   : > { %p400_p7 = pnand %p404_p10, %p1019_p12 }
  0xf4   : > { %p401_p0 = pneg %p400_p7 }
  0xf6   : > { %651 = dma.done.wait (%p401_p0), %s292_s13, 64  }
  0xf7   : > { %653 = vsyncadd (%p401_p0), %s292_s13, 4294967232  ;;  %s27_s30 = sadd.s32 1, %s704_s30   ;;  %s1021_s18 = sld [smem:[#allocation24_spill]] }
  0xf8   : > { %p947_p3 = scmp.ge.s32.totalorder %s27_s30, 14   ;;  %s1022_s24 = sld [smem:[#allocation18_spill]] }
  0xf9   : > { %s1023_s23 = sld [smem:[#allocation25_spill]]  ;;  %s1029_s0 = smov %s660_s1 }
  0xfa   : > { %s1024_s14 = sld [smem:[#allocation19_spill]]  ;;  %s1030_s1 = smov %s664_s20 }
  0xfb   : > { %s1025_s26 = sld [smem:[#allocation20_spill]]  ;;  %s1032_s21 = smov %s672_s22 }
  0xfc   : > { %s1026_s27 = sld [smem:[#allocation21_spill]]  ;;  %s1035_s25 = smov %s696_s28 }
  0xfd   : > { %s1027_s4 = sld [smem:[#allocation22_spill]]  ;;  %s1031_s20 = smov %s1021_s18 }
  0xfe   : > { %s1028_s29 = sld [smem:[#allocation23_spill]]  ;;  %s1033_s22 = smov %s1022_s24 }
  0xff   :  { %26 = sbr.rel (!%p947_p3) target bundleno = 26 (0x1a), region = 81 }
 0x100   : > { %s1034_s24 = smov %s1024_s14 }
 0x103   : > { %s1036_s28 = smov %s1027_s4 }
 0x104   :  { %297 = vsyncpa [#allocation10], 1 }
 0x105   :  { %299 = vsyncpa [#allocation10 + $0x1], 1 }
 0x106   :  { %300 = vsyncpa [#allocation11], 1 }
 0x107   :  { %302 = vsyncpa [#allocation11 + $0x1], 1 }

</bundles_post_ra>
